<compile_context>
chip_gen: v6e
topology: v6e:2x2x1
jax: 0.10.0
libtpu: 0.0.40
codegen_flags: <defaults>
</compile_context>

<pallas_src>
import jax
import jax.numpy as jnp
from jax.experimental import pallas as pl
from jax.experimental.pallas import tpu as pltpu
from typing import NamedTuple, Optional


def _round_up(x: int, m: int) -> int:
    return ((x + m - 1) // m) * m


def _pick_tile(dim_padded: int, max_tile: int, align: int) -> int:
    """Tile size (multiple of `align`) for a dim already padded to `align`.

    Minimizes extra padding first, prefers 256-multiples (v6e/v7x MXU feed
    width), then prefers larger tiles (fewer grid steps, less re-streaming).
    """
    max_tile = max(align, (max_tile // align) * align)
    if dim_padded <= max_tile:
        return dim_padded
    best_t, best_cost = align, None
    t = align
    while t <= max_tile:
        pad = _round_up(dim_padded, t) - dim_padded
        cost = (pad, 0 if t % 256 == 0 else 1, -t)
        if best_cost is None or cost < best_cost:
            best_t, best_cost = t, cost
        t += align
    return best_t


# ----------------------------- kernels ------------------------------------- #

def _linear_kernel_f32_inplace(x_ref, w_ref, b_ref, o_ref):
    """f32 output: the output block is VMEM-resident across the K axis, so seed
    it with the bias at k == 0 and accumulate MXU partials directly into it
    (saves a tm x tn f32 scratch and the finalize copy)."""
    @pl.when(pl.program_id(2) == 0)
    def _init():
        o_ref[...] = jnp.zeros_like(o_ref) + b_ref[...]

    o_ref[...] += jnp.dot(x_ref[...], w_ref[...],
                          preferred_element_type=jnp.float32)


def _linear_kernel_acc(x_ref, w_ref, b_ref, o_ref, acc_ref):
    """Non-f32 output: accumulate in an f32 VMEM scratch, cast once at k==last."""
    k = pl.program_id(2)

    @pl.when(k == 0)
    def _init():
        acc_ref[...] = jnp.zeros_like(acc_ref) + b_ref[...]

    acc_ref[...] += jnp.dot(x_ref[...], w_ref[...],
                            preferred_element_type=jnp.float32)

    @pl.when(k == pl.num_programs(2) - 1)
    def _finalize():
        o_ref[...] = acc_ref[...].astype(o_ref.dtype)


# --------------------------- weight preparation ----------------------------- #

class PreparedLinear(NamedTuple):
    w_padded: jax.Array   # (INp, OUTp), compute dtype, transposed + padded
    b_padded: jax.Array   # (1, OUTp), float32
    in_features: int
    out_features: int
    tn: int
    tk: int
    w_buffers: int        # requested pipeline depth for the weight stream
    compute_dtype: object


def prepare_linear_params(weights, bias, *, mxu_dtype=jnp.bfloat16,
                          max_tm: int = 512, max_tn: int = 512,
                          max_tk: int = 1024,
                          batch_hint: Optional[int] = None) -> PreparedLinear:
    """One-time (per layer, not per call) transpose + cast + pad of the static
    weight / bias, plus N/K tile selection.  Hoisting this out of forward()
    removes 2-3 full HBM passes over the weight per call."""
    OUT, IN = weights.shape
    compute_dtype = mxu_dtype if mxu_dtype is not None else weights.dtype
    w_t = weights.T.astype(compute_dtype)          # (IN, OUT): MXU feed order

    OUT128 = _round_up(OUT, 128)
    IN128 = _round_up(IN, 128)

    is_bf16 = jnp.dtype(compute_dtype) == jnp.dtype(jnp.bfloat16)
    align_m = 16 if is_bf16 else 8                 # full sublane packing for bf16

    small_batch = (batch_hint is not None
                   and _round_up(batch_hint, align_m) <= min(64, max_tm))
    w_buffers = 3 if small_batch else 2
    if small_batch:
        # Pure weight streaming: maximize the tk x tn weight tile and deepen
        # the weight pipeline so DMA latency stays hidden.
        max_tk = max(max_tk, 2048)

    tk = _pick_tile(IN128, max_tk, 128)
    tn = _pick_tile(OUT128, max_tn, 128)

    # v7x has 2 TensorCores: if the batch fits in one M tile, keep >= 2
    # parallel blocks along N so the second core isn't idle.
    one_m_block = (batch_hint is not None
                   and _round_up(batch_hint, align_m) <= max_tm)
    if one_m_block and OUT128 // tn < 2 and OUT128 >= 256:
        tn = _pick_tile(OUT128, (OUT128 // 2) // 128 * 128, 128)

    INp = _round_up(IN128, tk)
    OUTp = _round_up(OUT128, tn)

    w_padded = jnp.pad(w_t, ((0, INp - IN), (0, OUTp - OUT)))
    b_padded = jnp.pad(bias.astype(jnp.float32).reshape(1, OUT),
                       ((0, 0), (0, OUTp - OUT)))
    return PreparedLinear(w_padded, b_padded, IN, OUT, tn, tk, w_buffers,
                          compute_dtype)


# ------------------------------ forward pass -------------------------------- #

def dynamic_layer_forward_prepared(x, prep: PreparedLinear, *,
                                   max_tm: int = 512, out_dtype=None):
    """Pallas forward with pre-prepared (transposed/padded) weights."""
    orig_shape = x.shape
    if x.ndim != 2:
        x = x.reshape(-1, orig_shape[-1])
    B, IN = x.shape
    assert IN == prep.in_features, "weight / input feature-dim mismatch"
    OUT = prep.out_features
    out_dtype = x.dtype if out_dtype is None else out_dtype

    INp, OUTp = prep.w_padded.shape
    tn, tk = prep.tn, prep.tk
    cdt = prep.compute_dtype

    is_bf16 = jnp.dtype(cdt) == jnp.dtype(jnp.bfloat16)
    align_m = 16 if is_bf16 else 8
    Bm = _round_up(B, align_m)
    tm = Bm if Bm <= max_tm else _pick_tile(Bm, max_tm, align_m)
    Bp = _round_up(Bm, tm)

    x_p = jnp.pad(x.astype(cdt), ((0, Bp - B), (0, INp - IN)))

    grid = (Bp // tm, OUTp // tn, INp // tk)

    # Weight pipeline depth: only go deeper than double-buffering when there
    # are enough distinct weight blocks to benefit.
    n_w_blocks = (INp // tk) * (OUTp // tn)
    w_buffers = prep.w_buffers if n_w_blocks >= prep.w_buffers else 2
    if w_buffers > 2:
        w_spec = pl.BlockSpec((tk, tn), lambda i, j, k: (k, j),
                              pipeline_mode=pl.Buffered(w_buffers))
    else:
        w_spec = pl.BlockSpec((tk, tn), lambda i, j, k: (k, j))

    accumulate_in_place = jnp.dtype(out_dtype) == jnp.dtype(jnp.float32)
    kernel = _linear_kernel_f32_inplace if accumulate_in_place else _linear_kernel_acc
    scratch_shapes = ([] if accumulate_in_place
                      else [pltpu.VMEM((tm, tn), jnp.float32)])

    # Explicit VMEM budget: prevents v5e's 16 MiB scoped default from shrinking
    # the pipeline, and stays well below v7x's 64 MiB physical VMEM.
    itemsize = jnp.dtype(cdt).itemsize
    out_itemsize = jnp.dtype(out_dtype).itemsize
    tile_bytes = (2 * tm * tk * itemsize              # x, double-buffered
                  + w_buffers * tk * tn * itemsize    # w, 2- or 3-deep
                  + 2 * tm * tn * out_itemsize        # out, double-buffered
                  + 2 * tn * 4                        # bias strip
                  + (0 if accumulate_in_place else tm * tn * 4))
    vmem_limit = int(min(64 * 1024 * 1024,
                         max(32 * 1024 * 1024, int(tile_bytes * 1.5))))

    # Advisory cost hint; accounts for x / w re-streaming across the grid.
    bytes_accessed = ((OUTp // tn) * Bp * INp * itemsize
                      + (Bp // tm) * INp * OUTp * itemsize
                      + Bp * OUTp * out_itemsize
                      + OUTp * 4)

    out_p = pl.pallas_call(
        kernel,
        out_shape=jax.ShapeDtypeStruct((Bp, OUTp), out_dtype),
        grid_spec=pltpu.PrefetchScalarGridSpec(
            num_scalar_prefetch=0,
            grid=grid,
            in_specs=[
                pl.BlockSpec((tm, tk), lambda i, j, k: (i, k)),   # x tile
                w_spec,                                           # w_t tile
                pl.BlockSpec((1, tn), lambda i, j, k: (0, j)),    # bias strip
            ],
            out_specs=pl.BlockSpec((tm, tn), lambda i, j, k: (i, j)),
            scratch_shapes=scratch_shapes,
        ),
        compiler_params=pltpu.CompilerParams(
            dimension_semantics=("parallel", "parallel", "arbitrary"),
            vmem_limit_bytes=vmem_limit,
        ),
        cost_estimate=pl.CostEstimate(
            flops=2 * Bp * INp * OUTp,
            transcendentals=0,
            bytes_accessed=bytes_accessed,
        ),
    )(x_p, prep.w_padded, prep.b_padded)

    out = out_p[:B, :OUT]
    if len(orig_shape) != 2:
        out = out.reshape(*orig_shape[:-1], OUT)
    return out


def dynamic_layer_forward(x, weights, bias, *, mxu_dtype=jnp.bfloat16,
                          max_tm=512, max_tn=512, max_tk=1024, out_dtype=None):
    """Convenience one-shot wrapper (prepares weights every call).  For repeated
    forwards, use prepare_linear_params once or the DynamicLayer class below."""
    prep = prepare_linear_params(
        weights, bias, mxu_dtype=mxu_dtype, max_tm=max_tm, max_tn=max_tn,
        max_tk=max_tk, batch_hint=x.reshape(-1, x.shape[-1]).shape[0])
    return dynamic_layer_forward_prepared(x, prep, max_tm=max_tm,
                                          out_dtype=out_dtype)


# --------------------------- module-level wrapper ---------------------------- #

class DynamicLayer:
    """JAX/Pallas port of the PyTorch DynamicLayer.

    forward() runs the Pallas kernel with weights prepared (transposed / cast /
    padded) exactly once; grow_neurons / adjust_input_dim / loss bookkeeping are
    host-side parameter surgery with no kernel equivalent and just invalidate
    the cached preparation.
    """
    # TODO(synk): grow_neurons / adjust_input_dim / loss bookkeeping are host-side
    # parameter surgery; only forward() is a TPU kernel.

    def __init__(self, input_features, output_features, init_weights=None,
                 init_bias=None, *, key=None, mxu_dtype=jnp.bfloat16):
        self.input_features = input_features
        self.output_features = output_features
        if key is None:
            key = jax.random.PRNGKey(0)
        kw, kb = jax.random.split(key)
        self.weights = (init_weights if init_weights is not None else
                        jax.random.normal(kw, (output_features, input_features),
                                          dtype=jnp.float32))
        self.bias = (init_bias if init_bias is not None else
                     jax.random.normal(kb, (output_features,), dtype=jnp.float32))
        self.mxu_dtype = mxu_dtype
        self.running_loss = 0.0
        self.loss_count = 0
        self._prep = None

    def _prepare(self, batch_hint):
        self._prep = prepare_linear_params(
            self.weights, self.bias, mxu_dtype=self.mxu_dtype,
            batch_hint=batch_hint)

    def forward(self, x, out_dtype=None):
        if self._prep is None:
            self._prepare(x.reshape(-1, x.shape[-1]).shape[0])
        return dynamic_layer_forward_prepared(x, self._prep, out_dtype=out_dtype)

    __call__ = forward

    def grow_neurons(self, new_output_features):
        zw = jnp.zeros((new_output_features, self.input_features),
                       dtype=self.weights.dtype)
        zb = jnp.zeros((new_output_features,), dtype=self.bias.dtype)
        self.weights = jnp.concatenate([self.weights, zw], axis=0)
        self.bias = jnp.concatenate([self.bias, zb])
        self.output_features += new_output_features
        self._prep = None

    def adjust_input_dim(self, new_input_features):
        zw = jnp.zeros((self.output_features,
                        new_input_features - self.input_features),
                       dtype=self.weights.dtype)
        self.weights = jnp.concatenate([self.weights, zw], axis=1)
        self.input_features = new_input_features
        self._prep = None

    def record_loss(self, loss):
        self.running_loss += loss
        self.loss_count += 1

    def get_average_loss(self):
        return 0 if self.loss_count == 0 else self.running_loss / self.loss_count

    def reset_loss(self):
        self.running_loss = 0
        self.loss_count = 0


# ---------------------------------- tests ------------------------------------ #

if __name__ == "__main__":
    key = jax.random.PRNGKey(0)
    keys = jax.random.split(key, 8)

    # --- small shapes matching the module's toy config ---
    batch, in_f, out_f = 8, 32, 16
    x = jax.random.normal(keys[0], (batch, in_f), dtype=jnp.float32)
    w = jax.random.normal(keys[1], (out_f, in_f), dtype=jnp.float32)
    b = jax.random.normal(keys[2], (out_f,), dtype=jnp.float32)

    # f32 MXU path: matches F.linear numerics.
    out_f32 = jax.block_until_ready(dynamic_layer_forward(x, w, b, mxu_dtype=None))
    ref_f32 = x @ w.T + b
    assert out_f32.shape == (batch, out_f)
    assert jnp.allclose(out_f32, ref_f32, atol=1e-4, rtol=1e-4), "f32 path mismatch"

    # Default bf16-in / f32-accumulate path (in-place f32 output accumulator).
    ref_bf16 = (jnp.dot(x.astype(jnp.bfloat16), w.T.astype(jnp.bfloat16),
                        preferred_element_type=jnp.float32) + b)
    out_bf16 = jax.block_until_ready(dynamic_layer_forward(x, w, b))
    assert jnp.allclose(out_bf16, ref_bf16, atol=1e-2, rtol=1e-2), "bf16 path mismatch"

    # bf16 output dtype -> exercises the scratch-accumulator kernel variant.
    out_bf16o = jax.block_until_ready(
        dynamic_layer_forward(x, w, b, out_dtype=jnp.bfloat16))
    assert out_bf16o.dtype == jnp.bfloat16
    assert jnp.allclose(out_bf16o.astype(jnp.float32), ref_bf16,
                        atol=1e-1, rtol=2e-2), "bf16-out path mismatch"

    # --- class wrapper: weights prepared once; surgery re-prepares ---
    layer = DynamicLayer(in_f, out_f, init_weights=w, init_bias=b)
    out_cls = jax.block_until_ready(layer.forward(x))
    assert jnp.allclose(out_cls, ref_bf16, atol=1e-2, rtol=1e-2), "class path mismatch"
    layer.grow_neurons(8)
    out_grown = jax.block_until_ready(layer.forward(x))
    assert out_grown.shape == (batch, out_f + 8)
    assert jnp.allclose(out_grown[:, :out_f], ref_bf16, atol=1e-2, rtol=1e-2)
    assert jnp.allclose(out_grown[:, out_f:], 0.0, atol=1e-6), "grown neurons not zero"

    # --- non-aligned, multi-tile shapes: padding + full (M, N, K) grid ---
    B2, IN2, OUT2 = 96, 600, 384
    x2 = jax.random.normal(keys[3], (B2, IN2), dtype=jnp.float32)
    w2 = jax.random.normal(keys[4], (OUT2, IN2), dtype=jnp.float32)
    b2 = jax.random.normal(keys[5], (OUT2,), dtype=jnp.float32)
    out2 = jax.block_until_ready(
        dynamic_layer_forward(x2, w2, b2, max_tm=32, max_tn=128, max_tk=256))
    ref2 = (jnp.dot(x2.astype(jnp.bfloat16), w2.T.astype(jnp.bfloat16),
                    preferred_element_type=jnp.float32) + b2)
    assert out2.shape == (B2, OUT2)
    assert jnp.allclose(out2, ref2, atol=1e-1, rtol=5e-2), "tiled path mismatch"

    # --- small-batch weight-streaming path (3-deep weight pipeline) ---
    B3, IN3, OUT3 = 4, 4096, 768
    x3 = jax.random.normal(keys[6], (B3, IN3), dtype=jnp.float32)
    w3 = jax.random.normal(keys[7], (OUT3, IN3), dtype=jnp.float32) / 64.0
    b3 = jnp.zeros((OUT3,), dtype=jnp.float32)
    out3 = jax.block_until_ready(dynamic_layer_forward(x3, w3, b3))
    ref3 = (jnp.dot(x3.astype(jnp.bfloat16), w3.T.astype(jnp.bfloat16),
                    preferred_element_type=jnp.float32) + b3)
    assert out3.shape == (B3, OUT3)
    assert jnp.allclose(out3, ref3, atol=1e-1, rtol=5e-2), "small-batch path mismatch"

    print("KERNEL_OK")
</pallas_src>

<mosaic_0001>
module attributes {stable_mosaic.version = 11 : i64} {
  func.func @_linear_kernel_f32_inplace(%arg0: i32, %arg1: i32, %arg2: i32, %arg3: memref<8x128xf32, #tpu.memory_space<vmem>>, %arg4: memref<128x128xf32, #tpu.memory_space<vmem>>, %arg5: memref<1x128xf32, #tpu.memory_space<vmem>>, %arg6: memref<8x128xf32, #tpu.memory_space<vmem>>) attributes {dimension_semantics = [#tpu.dimension_semantics<parallel>, #tpu.dimension_semantics<parallel>, #tpu.dimension_semantics<arbitrary>], iteration_bounds = array<i64: 1, 1, 1>, scalar_prefetch = 0 : i64, scratch_operands = 0 : i64, tpu.core_type = #tpu.core_type<tc>, window_params = [{transform_indices = @transform_0, window_bounds = array<i64: 8, 128>}, {transform_indices = @transform_1, window_bounds = array<i64: 128, 128>}, {transform_indices = @transform_2, window_bounds = array<i64: 1, 128>}, {transform_indices = @transform_3, window_bounds = array<i64: 8, 128>}]} {
    %c0_i32 = arith.constant 0 : i32
    %0 = arith.cmpi eq, %arg2, %c0_i32 : i32
    %1 = arith.extui %0 : i1 to i32
    %c0_i32_0 = arith.constant 0 : i32
    %2 = arith.cmpi ne, %1, %c0_i32_0 : i32
    scf.if %2 {
      %cst_8 = arith.constant 0.000000e+00 : f32
      %9 = vector.broadcast %cst_8 : f32 to vector<8x128xf32>
      %c0_9 = arith.constant 0 : index
      %c0_10 = arith.constant 0 : index
      %10 = vector.load %arg5[%c0_9, %c0_10] : memref<1x128xf32, #tpu.memory_space<vmem>>, vector<1x128xf32>
      %11 = vector.broadcast %10 : vector<1x128xf32> to vector<8x128xf32>
      %12 = arith.addf %9, %11 : vector<8x128xf32>
      %c0_11 = arith.constant 0 : index
      %c0_12 = arith.constant 0 : index
      %13 = vector.load %arg6[%c0_11, %c0_12] : memref<8x128xf32, #tpu.memory_space<vmem>>, vector<8x128xf32>
      tpu.vector_store %arg6[%c0_11, %c0_12], %12 {strides = array<i32>} : memref<8x128xf32, #tpu.memory_space<vmem>>, vector<8x128xf32>,
    } else {
    }
    %c0 = arith.constant 0 : index
    %c0_1 = arith.constant 0 : index
    %3 = vector.load %arg6[%c0, %c0_1] : memref<8x128xf32, #tpu.memory_space<vmem>>, vector<8x128xf32>
    %c0_2 = arith.constant 0 : index
    %c0_3 = arith.constant 0 : index
    %4 = vector.load %arg3[%c0_2, %c0_3] : memref<8x128xf32, #tpu.memory_space<vmem>>, vector<8x128xf32>
    %c0_4 = arith.constant 0 : index
    %c0_5 = arith.constant 0 : index
    %5 = vector.load %arg4[%c0_4, %c0_5] : memref<128x128xf32, #tpu.memory_space<vmem>>, vector<128x128xf32>
    %cst = arith.constant dense<0.000000e+00> : vector<8x128xf32>
    %6 = tpu.matmul %4, %5, %cst {dimension_numbers = #tpu.dot_dimension_numbers<[1], [0], [0], [1], [0, 0, 1, 1], [], []>} : vector<8x128xf32>, vector<128x128xf32>, vector<8x128xf32> -> vector<8x128xf32>
    %7 = arith.addf %3, %6 : vector<8x128xf32>
    %c0_6 = arith.constant 0 : index
    %c0_7 = arith.constant 0 : index
    %8 = vector.load %arg6[%c0_6, %c0_7] : memref<8x128xf32, #tpu.memory_space<vmem>>, vector<8x128xf32>
    tpu.vector_store %arg6[%c0_6, %c0_7], %7 {strides = array<i32>} : memref<8x128xf32, #tpu.memory_space<vmem>>, vector<8x128xf32>,
    return
  }
  func.func @transform_0(%arg0: i32, %arg1: i32, %arg2: i32) -> (i32, i32) {
    %c0_i32 = arith.constant 0 : i32
    return %arg0, %arg2 : i32, i32
  }
  func.func @transform_1(%arg0: i32, %arg1: i32, %arg2: i32) -> (i32, i32) {
    %c0_i32 = arith.constant 0 : i32
    return %arg2, %arg1 : i32, i32
  }
  func.func @transform_2(%arg0: i32, %arg1: i32, %arg2: i32) -> (i32, i32) {
    %c0_i32 = arith.constant 0 : i32
    %c0_i32_0 = arith.constant 0 : i32
    return %c0_i32, %arg1 : i32, i32
  }
  func.func @transform_3(%arg0: i32, %arg1: i32, %arg2: i32) -> (i32, i32) {
    %c0_i32 = arith.constant 0 : i32
    return %arg0, %arg1 : i32, i32
  }
}

</mosaic_0001>

<bundles_post_ra>
// kernel: tpu_custom_call.1
= control target key start
LH: loop header
LB: loop body
LE: loop exit
PB: predicated region body
PF: predicated region fallthrough
CT: control target
= control target key end

     0   :  { %8 = vsyncpa [#allocation3], 0  ;;  %s325_s0 = inlined_call_operand.hbm [shape: f32[8,128], index: 0, kind: input, shape index: {}]   ;;  %s326_s1 = inlined_call_operand.hbm [shape: f32[128,128], index: 1, kind: input, shape index: {}]   ;;  %s327_s2 = inlined_call_operand.vmem [shape: f32[1,128], index: 2, kind: input, shape index: {}]   ;;  %s328_s3 = inlined_call_operand.hbm [shape: f32[8,128], index: 3, kind: output, shape index: {}]  }
   0x1   :  { %9 = vsyncpa [#allocation6], 0 }
   0x2   :  { %10 = vsyncpa [#allocation4], 0  ;;  %s286_s12 = smov [#allocation2]   ;;  %s287_s14 = smov [#allocation5]  }
   0x3   :  { %s17_s13 = sshll.u32 %s286_s12, 4  ;;  %s26_s15 = sshll.u32 %s287_s14, 4  ;;  %s18_s13 = int_to_ptr.vmem [resolvable:$true] %s17_s13  ;;  %s27_s15 = int_to_ptr.vmem [resolvable:$true] %s26_s15 }
   0x4   :  { %s228_s16 = scalar_lea.vmem %s18_s13, 128  ;;  %p233_p1 = scmp.lt.s32.totalorder %s18_s13, %s18_s13 }
   0x5   :  { %p229_p0 = scmp.ne.s32.totalorder %s18_s13, %s228_s16  ;;  %p234_p2 = scmp.lt.s32.totalorder %s228_s16, %s228_s16 }
   0x7   :  { %p235_p3 = por %p234_p2, %p233_p1 }
   0x9   :  { %p236_p4 = pnand %p235_p3, %p229_p0 }
   0xb   :  { %239 = shalt.err (!%p236_p4)
}
   0xc   :  { %20 = dma.hbm_to_vmem [thread:$0]  %s325_s0, 128, %s18_s13, [#allocation3]  }
   0xd   :  { %s248_s19 = scalar_lea.vmem %s27_s15, 2048  ;;  %p253_p6 = scmp.lt.s32.totalorder %s27_s15, %s27_s15 }
   0xe   :  { %p249_p5 = scmp.ne.s32.totalorder %s27_s15, %s248_s19  ;;  %p254_p7 = scmp.lt.s32.totalorder %s248_s19, %s248_s19 }
  0x10   :  { %p255_p8 = por %p254_p7, %p253_p6 }
  0x12   :  { %p256_p9 = pnand %p255_p8, %p249_p5 }
  0x14   :  { %259 = shalt.err (!%p256_p9)
}
  0x15   :  { %s288_s20 = smov 128   ;;  %s289_s21 = smov 8  }
  0x16   :  { %32 = dma.hbm_to_vmem [thread:$0]  %s326_s1, 2048, %s27_s15, [#allocation6], %s288_s20, %s288_s20, %s289_s21  }
  0x17   :  { %280 = dma.done.wait [#allocation3], 128  }
  0x18   :  { %281 = vsyncadd [#allocation3], 4294967168 }
  0x19   :  { %282 = dma.done.wait [#allocation6], 2048  }
  0x1a   :  { %283 = vsyncadd [#allocation6], 4294965248  ;;  %v290_v0 = vmov 0.0   ;;  %vm291_vm0 = vmmov 0   ;;  %v71_v1 = vld [vmem:[#allocation5 + $0x78] sm:$0xff]  ;;  %v70_v2 = vld [vmem:[#allocation5 + $0x70] sm:$0xff] }
  0x1b   :  { %178 = vmatprep.subr.mxu0 %v290_v0  ;;  %210 = vmatprep.mubr.msk.f32.mxu0 %vm291_vm0, %v290_v0  ;;  %v69_v3 = vld [vmem:[#allocation5 + $0x68] sm:$0xff]  ;;  %v68_v4 = vld [vmem:[#allocation5 + $0x60] sm:$0xff]  ;;  %v67_v5 = vld [vmem:[#allocation5 + $0x58] sm:$0xff]  ;;  %s292_s24 = smov [#allocation7]  }
  0x1c   :  { %179 = vmatpush3.msra.mxu0 %v71_v1  ;;  %v66_v6 = vld [vmem:[#allocation5 + $0x50] sm:$0xff]  ;;  %v65_v7 = vld [vmem:[#allocation5 + $0x48] sm:$0xff]  ;;  %v64_v8 = vld [vmem:[#allocation5 + $0x40] sm:$0xff]  ;;  %s150_s25 = sshll.u32 %s292_s24, 4  ;;  %s151_s25 = int_to_ptr.vmem [resolvable:$true] %s150_s25 }
  0x1d   :  { %180 = vmatprep.subr.mxu0 %v290_v0  ;;  %v63_v9 = vld [vmem:[#allocation5 + $0x38] sm:$0xff]  ;;  %v62_v10 = vld [vmem:[#allocation5 + $0x30] sm:$0xff]  ;;  %v61_v11 = vld [vmem:[#allocation5 + $0x28] sm:$0xff]  ;;  %s260_s26 = scalar_lea.vmem %s151_s25, 128  ;;  %p265_p11 = scmp.lt.s32.totalorder %s151_s25, %s151_s25 }
  0x1e   :  { %181 = vmatpush3.msra.mxu0 %v70_v2  ;;  %v60_v12 = vld [vmem:[#allocation5 + $0x20] sm:$0xff]  ;;  %v59_v13 = vld [vmem:[#allocation5 + $0x18] sm:$0xff]  ;;  %v58_v14 = vld [vmem:[#allocation5 + $0x10] sm:$0xff]  ;;  %p261_p10 = scmp.ne.s32.totalorder %s151_s25, %s260_s26  ;;  %p266_p12 = scmp.lt.s32.totalorder %s260_s26, %s260_s26 }
  0x1f   :  { %182 = vmatprep.subr.mxu0 %v290_v0  ;;  %v57_v15 = vld [vmem:[#allocation5 + $0x8] sm:$0xff]  ;;  %v56_v16 = vld [vmem:[#allocation5] sm:$0xff]  ;;  %v55_v17 = vld [vmem:[#allocation2] sm:$0xff] }
  0x20   :  { %183 = vmatpush3.msra.mxu0 %v69_v3  ;;  %v160_v18 = vld [vmem:[%s327_s2] ss:$0 sm:$0xff]  ;;  %p267_p13 = por %p266_p12, %p265_p11 }
  0x21   :  { %184 = vmatprep.subr.mxu0 %v290_v0 }
  0x22   :  { %185 = vmatpush3.msra.mxu0 %v68_v4  ;;  %p268_p0 = pnand %p267_p13, %p261_p10 }
  0x23   :  { %186 = vmatprep.subr.mxu0 %v290_v0 }
  0x24   :  { %187 = vmatpush3.msra.mxu0 %v67_v5 }
  0x25   :  { %188 = vmatprep.subr.mxu0 %v290_v0 }
  0x26   :  { %189 = vmatpush3.msra.mxu0 %v66_v6 }
  0x27   :  { %190 = vmatprep.subr.mxu0 %v290_v0 }
  0x28   :  { %191 = vmatpush3.msra.mxu0 %v65_v7 }
  0x29   :  { %192 = vmatprep.subr.mxu0 %v290_v0 }
  0x2a   :  { %193 = vmatpush3.msra.mxu0 %v64_v8 }
  0x2b   :  { %194 = vmatprep.subr.mxu0 %v290_v0 }
  0x2c   :  { %195 = vmatpush3.msra.mxu0 %v63_v9 }
  0x2d   :  { %196 = vmatprep.subr.mxu0 %v290_v0 }
  0x2e   :  { %197 = vmatpush3.msra.mxu0 %v62_v10 }
  0x2f   :  { %198 = vmatprep.subr.mxu0 %v290_v0 }
  0x30   :  { %199 = vmatpush3.msra.mxu0 %v61_v11 }
  0x31   :  { %200 = vmatprep.subr.mxu0 %v290_v0 }
  0x32   :  { %201 = vmatpush3.msra.mxu0 %v60_v12 }
  0x33   :  { %202 = vmatprep.subr.mxu0 %v290_v0 }
  0x34   :  { %203 = vmatpush3.msra.mxu0 %v59_v13 }
  0x35   :  { %204 = vmatprep.subr.mxu0 %v290_v0 }
  0x36   :  { %205 = vmatpush3.msra.mxu0 %v58_v14 }
  0x37   :  { %206 = vmatprep.subr.mxu0 %v290_v0 }
  0x38   :  { %207 = vmatpush3.msra.mxu0 %v57_v15 }
  0x39   :  { %208 = vmatprep.subr.mxu0 %v290_v0 }
  0x3a   :  { %209 = vmatpush3.msra.mxu0 %v56_v16 }
  0x3b   :  { %211 = vmatmul.mubr.f32.vlgmr.msra.gmra.mxu0 %v55_v17 }
  0xfb   :  { %v138_v19 = vpop.f32.mrf.mxu0 }
  0xfc   :  { %v142_v20 = vadd.f32 %v160_v18, %v138_v19 }
  0xfd   :  { %v212_v21 = vpop.f32.mrf.mxu0 }
  0xfe   :  { %143 = vst [vmem:[#allocation7] sm:$0xff] %v142_v20 }
  0xff   :  { %271 = shalt.err (!%p268_p0)
}
 0x100   :  { %153 = dma.vmem_to_hbm [thread:$0]  %s151_s25, 128, %s328_s3, [#allocation4]  }
 0x101   :  { %284 = dma.done.wait [#allocation4], 128  }
 0x102   :  { %285 = vsyncadd [#allocation4], 4294967168 }
 0x103   :  { %157 = vsyncpa [#allocation3], 1 }
 0x104   :  { %158 = vsyncpa [#allocation6], 1 }
 0x105   :  { %159 = vsyncpa [#allocation4], 1 }

</bundles_post_ra>
